<compile_context>
chip_gen: v7x
topology: tpu7x:2x2x1
jax: 0.10.0
libtpu: 0.0.40
codegen_flags: <defaults>
</compile_context>

<pallas_src>
import jax
import jax.numpy as jnp
from jax.experimental import pallas as pl
from jax.experimental.pallas import tpu as pltpu

C_OUT = 10
KSIZE = 5
H = W = 28            # conv output spatial (stride 1, pad 2)
HP = WP = 27          # after 2x2 stride-1 max pool
PADP = 32             # zero-padded input plane size (28 + 2*2)
CBLK = 32             # lanes reserved per output channel in the lane-dense layout
LANES = C_OUT * CBLK  # 320
FLAT_PAD = HP * LANES # 8640  (padded/flattened feature dim fed to fc1)
FLAT = C_OUT * HP * WP  # 7290 (torch flatten size)
HIDDEN = 128
N_CLASSES = 10


def _conv_relu_pool_kernel(x_ref, m_ref, b_ref, out_ref):
    # x_ref  : VMEM (1, 32, 32)   zero-padded input plane of this image
    # m_ref  : VMEM (5, 32, 640)  lowered-conv matrices (resident across grid)
    # b_ref  : VMEM (1, 640)      per-lane conv bias (channel-block expanded, duplicated)
    # out_ref: VMEM (1, 27, 320)  lane-dense pooled features of this image
    x = x_ref[0]                                                     # (32, 32)
    acc = jnp.dot(x[0:H, :], m_ref[0], preferred_element_type=jnp.float32)
    for kh in range(1, KSIZE):
        acc = acc + jnp.dot(x[kh:kh + H, :], m_ref[kh],
                            preferred_element_type=jnp.float32)      # (28, 640)
    a = jnp.maximum(acc + b_ref[...], 0.0)                           # conv + bias + ReLU
    h = jnp.maximum(a[:, :LANES], a[:, LANES:])                      # max over (j, j+1) -> (28, 320)
    pooled = jnp.maximum(h[:HP, :], h[1:, :])                        # max over (i, i+1) -> (27, 320)
    col = jax.lax.broadcasted_iota(jnp.int32, (HP, LANES), 1)
    out_ref[0] = jnp.where(col % CBLK < WP, pooled, 0.0)             # zero the 5 pad lanes / block


def _mlp_kernel(x_ref, w1_ref, b1_ref, w2_ref, b2_ref, out_ref):
    # fc(8640->128) + ReLU + fc(128->10), both on the MXU, weights resident in VMEM.
    h = jnp.dot(x_ref[...], w1_ref[...], preferred_element_type=jnp.float32)
    h = jnp.maximum(h + b1_ref[...], 0.0)
    out_ref[...] = (
        jnp.dot(h, w2_ref[...], preferred_element_type=jnp.float32) + b2_ref[...]
    )


def _conv_matrices(conv_w):
    # Build M of shape (5, 32, 640):
    #   M[kh, s, c*32 + j]       = conv_w[c, 0, kh, s - j]     if 0 <= s-j <= 4 and j <= 27
    #   M[kh, s, 320 + c*32 + j] = conv_w[c, 0, kh, s - j - 1]  if 0 <= s-j-1 <= 4 and j <= 26
    # so that  conv[c, i, j]   = sum_kh (x_pad[i+kh, :] @ M[kh])[c*32 + j]
    # and      conv[c, i, j+1] = sum_kh (x_pad[i+kh, :] @ M[kh])[320 + c*32 + j].
    wk = conv_w[:, 0]                                       # (10, 5, 5) [c, kh, kw]
    s = jnp.arange(PADP)[:, None]                           # (32, 1)
    j = jnp.arange(CBLK)[None, :]                           # (1, 32)
    mats = []
    for d in (0, 1):
        kw = s - j - d                                      # (32, 32)
        valid = (kw >= 0) & (kw <= KSIZE - 1) & (j <= H - 1 - d)
        g = wk[:, :, jnp.clip(kw, 0, KSIZE - 1)]            # (10, 5, 32, 32) [c, kh, s, j]
        g = jnp.where(valid[None, None], g, 0.0)
        g = jnp.transpose(g, (1, 2, 0, 3))                  # (5, 32, 10, 32) [kh, s, c, j]
        mats.append(g.reshape(KSIZE, PADP, LANES))
    return jnp.concatenate(mats, axis=-1)                   # (5, 32, 640)


def _fc1_weight(w1):
    # Re-lay fc1 weight rows from torch-flatten order (c*729 + i*27 + j) to the kernel's
    # lane-dense order (i*320 + c*32 + j), zero rows for the 5 pad lanes per channel block.
    w1r = w1.reshape(C_OUT, HP, WP, HIDDEN)                 # (c, i, j, k)
    w1r = jnp.pad(w1r, ((0, 0), (0, 0), (0, CBLK - WP), (0, 0)))   # j -> 32
    w1r = jnp.transpose(w1r, (1, 0, 2, 3))                  # (i, c, j, k)
    return w1r.reshape(FLAT_PAD, HIDDEN)                    # (8640, 128)


def cnn_forward(x, params):
    n = x.shape[0]
    # pad=2 on the 28x28 plane (wrapper-side; layout plumbing only)
    xpad = jnp.pad(x[:, 0].astype(jnp.float32), ((0, 0), (2, 2), (2, 2)))  # (N, 32, 32)
    m_cat = _conv_matrices(params["conv_w"])                               # (5, 32, 640)
    bias = jnp.tile(jnp.repeat(params["conv_b"], CBLK), 2).reshape(1, 2 * LANES)

    pooled = pl.pallas_call(
        _conv_relu_pool_kernel,
        out_shape=jax.ShapeDtypeStruct((n, HP, LANES), jnp.float32),
        grid=(n,),
        in_specs=[
            pl.BlockSpec((1, PADP, PADP), lambda b: (b, 0, 0)),
            pl.BlockSpec((KSIZE, PADP, 2 * LANES), lambda b: (0, 0, 0)),
            pl.BlockSpec((1, 2 * LANES), lambda b: (0, 0)),
        ],
        out_specs=pl.BlockSpec((1, HP, LANES), lambda b: (b, 0, 0)),
        compiler_params=pltpu.CompilerParams(dimension_semantics=("parallel",)),
    )(xpad, m_cat, bias)

    # nn.Dropout(0.2) is identity at inference time (eval mode).
    flat = pooled.reshape(n, FLAT_PAD)        # contiguous -> free bitcast reshape, K = 8640
    w1p = _fc1_weight(params["w1"])           # (8640, 128), pad rows are zero

    tm = n if n <= 128 else 128               # batch tile; weights stay resident across tiles
    out = pl.pallas_call(
        _mlp_kernel,
        out_shape=jax.ShapeDtypeStruct((n, N_CLASSES), jnp.float32),
        grid=(pl.cdiv(n, tm),),
        in_specs=[
            pl.BlockSpec((tm, FLAT_PAD), lambda i: (i, 0)),
            pl.BlockSpec((FLAT_PAD, HIDDEN), lambda i: (0, 0)),
            pl.BlockSpec((1, HIDDEN), lambda i: (0, 0)),
            pl.BlockSpec((HIDDEN, N_CLASSES), lambda i: (0, 0)),
            pl.BlockSpec((1, N_CLASSES), lambda i: (0, 0)),
        ],
        out_specs=pl.BlockSpec((tm, N_CLASSES), lambda i: (i, 0)),
        compiler_params=pltpu.CompilerParams(dimension_semantics=("parallel",)),
    )(flat, w1p, params["b1"].reshape(1, HIDDEN), params["w2"],
      params["b2"].reshape(1, N_CLASSES))
    return out


def _reference(x, p):
    conv = jax.lax.conv_general_dilated(
        x, p["conv_w"], window_strides=(1, 1), padding=((2, 2), (2, 2)),
        dimension_numbers=("NCHW", "OIHW", "NCHW"),
    )
    conv = jax.nn.relu(conv + p["conv_b"][None, :, None, None])
    pooled = jax.lax.reduce_window(
        conv, -jnp.inf, jax.lax.max, (1, 1, 2, 2), (1, 1, 1, 1), "VALID"
    )
    flat = pooled.reshape(x.shape[0], -1)
    h = jax.nn.relu(flat @ p["w1"] + p["b1"])
    return h @ p["w2"] + p["b2"]


if __name__ == "__main__":
    key = jax.random.PRNGKey(0)
    ks = jax.random.split(key, 7)
    # Deterministic synthetic parameters (shapes from the PyTorch __init__).
    params = {
        "conv_w": 0.1 * jax.random.normal(ks[0], (C_OUT, 1, KSIZE, KSIZE), jnp.float32),
        "conv_b": 0.1 * jax.random.normal(ks[1], (C_OUT,), jnp.float32),
        "w1": 0.02 * jax.random.normal(ks[2], (FLAT, HIDDEN), jnp.float32),
        "b1": 0.02 * jax.random.normal(ks[3], (HIDDEN,), jnp.float32),
        "w2": 0.1 * jax.random.normal(ks[4], (HIDDEN, N_CLASSES), jnp.float32),
        "b2": 0.1 * jax.random.normal(ks[5], (N_CLASSES,), jnp.float32),
    }
    # 28x28 input is forced by fc = Linear(27*27*10, 128)
    x = jax.random.normal(ks[6], (2, 1, 28, 28), jnp.float32)

    out = jax.block_until_ready(cnn_forward(x, params))
    ref = jax.block_until_ready(_reference(x, params))
    assert out.shape == (2, N_CLASSES)
    assert jnp.allclose(out, ref, rtol=2e-3, atol=2e-3), float(jnp.max(jnp.abs(out - ref)))
    print("KERNEL_OK")
</pallas_src>

<mosaic_0001>
module attributes {stable_mosaic.version = 11 : i64} {
  func.func @_conv_relu_pool_kernel(%arg0: i32, %arg1: memref<1x32x32xf32, #tpu.memory_space<vmem>>, %arg2: memref<5x32x640xf32, #tpu.memory_space<vmem>>, %arg3: memref<1x640xf32, #tpu.memory_space<vmem>>, %arg4: memref<1x27x320xf32, #tpu.memory_space<vmem>>) attributes {dimension_semantics = [#tpu.dimension_semantics<parallel>], iteration_bounds = array<i64: 2>, scalar_prefetch = 0 : i64, scratch_operands = 0 : i64, tpu.core_type = #tpu.core_type<tc>, window_params = [{transform_indices = @transform_0, window_bounds = array<i64: 1, 32, 32>}, {pipeline_mode = #tpu.pipeline_mode<synchronous>, transform_indices = @transform_1, window_bounds = array<i64: 5, 32, 640>}, {pipeline_mode = #tpu.pipeline_mode<synchronous>, transform_indices = @transform_2, window_bounds = array<i64: 1, 640>}, {transform_indices = @transform_3, window_bounds = array<i64: 1, 27, 320>}]} {
    %c0 = arith.constant 0 : index
    %c0_0 = arith.constant 0 : index
    %c0_1 = arith.constant 0 : index
    %0 = vector.load %arg1[%c0, %c0_0, %c0_1] : memref<1x32x32xf32, #tpu.memory_space<vmem>>, vector<1x32x32xf32>
    %1 = vector.shape_cast %0 : vector<1x32x32xf32> to vector<32x32xf32>
    %2 = vector.extract_strided_slice %1 {offsets = [0, 0], sizes = [28, 32], strides = [1, 1]} : vector<32x32xf32> to vector<28x32xf32>
    %c0_2 = arith.constant 0 : index
    %c0_3 = arith.constant 0 : index
    %c0_4 = arith.constant 0 : index
    %3 = vector.load %arg2[%c0_2, %c0_3, %c0_4] : memref<5x32x640xf32, #tpu.memory_space<vmem>>, vector<1x32x640xf32>
    %4 = vector.shape_cast %3 : vector<1x32x640xf32> to vector<32x640xf32>
    %cst = arith.constant dense<0.000000e+00> : vector<28x640xf32>
    %5 = tpu.matmul %2, %4, %cst {dimension_numbers = #tpu.dot_dimension_numbers<[1], [0], [0], [1], [0, 0, 1, 1], [], []>} : vector<28x32xf32>, vector<32x640xf32>, vector<28x640xf32> -> vector<28x640xf32>
    %6 = vector.extract_strided_slice %1 {offsets = [1, 0], sizes = [28, 32], strides = [1, 1]} : vector<32x32xf32> to vector<28x32xf32>
    %c1 = arith.constant 1 : index
    %c0_5 = arith.constant 0 : index
    %c0_6 = arith.constant 0 : index
    %7 = vector.load %arg2[%c1, %c0_5, %c0_6] : memref<5x32x640xf32, #tpu.memory_space<vmem>>, vector<1x32x640xf32>
    %8 = vector.shape_cast %7 : vector<1x32x640xf32> to vector<32x640xf32>
    %cst_7 = arith.constant dense<0.000000e+00> : vector<28x640xf32>
    %9 = tpu.matmul %6, %8, %cst_7 {dimension_numbers = #tpu.dot_dimension_numbers<[1], [0], [0], [1], [0, 0, 1, 1], [], []>} : vector<28x32xf32>, vector<32x640xf32>, vector<28x640xf32> -> vector<28x640xf32>
    %10 = arith.addf %5, %9 : vector<28x640xf32>
    %11 = vector.extract_strided_slice %1 {offsets = [2, 0], sizes = [28, 32], strides = [1, 1]} : vector<32x32xf32> to vector<28x32xf32>
    %c2 = arith.constant 2 : index
    %c0_8 = arith.constant 0 : index
    %c0_9 = arith.constant 0 : index
    %12 = vector.load %arg2[%c2, %c0_8, %c0_9] : memref<5x32x640xf32, #tpu.memory_space<vmem>>, vector<1x32x640xf32>
    %13 = vector.shape_cast %12 : vector<1x32x640xf32> to vector<32x640xf32>
    %cst_10 = arith.constant dense<0.000000e+00> : vector<28x640xf32>
    %14 = tpu.matmul %11, %13, %cst_10 {dimension_numbers = #tpu.dot_dimension_numbers<[1], [0], [0], [1], [0, 0, 1, 1], [], []>} : vector<28x32xf32>, vector<32x640xf32>, vector<28x640xf32> -> vector<28x640xf32>
    %15 = arith.addf %10, %14 : vector<28x640xf32>
    %16 = vector.extract_strided_slice %1 {offsets = [3, 0], sizes = [28, 32], strides = [1, 1]} : vector<32x32xf32> to vector<28x32xf32>
    %c3 = arith.constant 3 : index
    %c0_11 = arith.constant 0 : index
    %c0_12 = arith.constant 0 : index
    %17 = vector.load %arg2[%c3, %c0_11, %c0_12] : memref<5x32x640xf32, #tpu.memory_space<vmem>>, vector<1x32x640xf32>
    %18 = vector.shape_cast %17 : vector<1x32x640xf32> to vector<32x640xf32>
    %cst_13 = arith.constant dense<0.000000e+00> : vector<28x640xf32>
    %19 = tpu.matmul %16, %18, %cst_13 {dimension_numbers = #tpu.dot_dimension_numbers<[1], [0], [0], [1], [0, 0, 1, 1], [], []>} : vector<28x32xf32>, vector<32x640xf32>, vector<28x640xf32> -> vector<28x640xf32>
    %20 = arith.addf %15, %19 : vector<28x640xf32>
    %21 = vector.extract_strided_slice %1 {offsets = [4, 0], sizes = [28, 32], strides = [1, 1]} : vector<32x32xf32> to vector<28x32xf32>
    %c4 = arith.constant 4 : index
    %c0_14 = arith.constant 0 : index
    %c0_15 = arith.constant 0 : index
    %22 = vector.load %arg2[%c4, %c0_14, %c0_15] : memref<5x32x640xf32, #tpu.memory_space<vmem>>, vector<1x32x640xf32>
    %23 = vector.shape_cast %22 : vector<1x32x640xf32> to vector<32x640xf32>
    %cst_16 = arith.constant dense<0.000000e+00> : vector<28x640xf32>
    %24 = tpu.matmul %21, %23, %cst_16 {dimension_numbers = #tpu.dot_dimension_numbers<[1], [0], [0], [1], [0, 0, 1, 1], [], []>} : vector<28x32xf32>, vector<32x640xf32>, vector<28x640xf32> -> vector<28x640xf32>
    %25 = arith.addf %20, %24 : vector<28x640xf32>
    %c0_17 = arith.constant 0 : index
    %c0_18 = arith.constant 0 : index
    %26 = vector.load %arg3[%c0_17, %c0_18] : memref<1x640xf32, #tpu.memory_space<vmem>>, vector<1x640xf32>
    %27 = vector.broadcast %26 : vector<1x640xf32> to vector<28x640xf32>
    %28 = arith.addf %25, %27 : vector<28x640xf32>
    %cst_19 = arith.constant 0.000000e+00 : f32
    %29 = vector.broadcast %cst_19 : f32 to vector<28x640xf32>
    %30 = arith.maximumf %28, %29 : vector<28x640xf32>
    %31 = vector.extract_strided_slice %30 {offsets = [0, 0], sizes = [28, 320], strides = [1, 1]} : vector<28x640xf32> to vector<28x320xf32>
    %32 = vector.extract_strided_slice %30 {offsets = [0, 320], sizes = [28, 320], strides = [1, 1]} : vector<28x640xf32> to vector<28x320xf32>
    %33 = arith.maximumf %31, %32 : vector<28x320xf32>
    %34 = vector.extract_strided_slice %33 {offsets = [0, 0], sizes = [27, 320], strides = [1, 1]} : vector<28x320xf32> to vector<27x320xf32>
    %35 = vector.extract_strided_slice %33 {offsets = [1, 0], sizes = [27, 320], strides = [1, 1]} : vector<28x320xf32> to vector<27x320xf32>
    %36 = arith.maximumf %34, %35 : vector<27x320xf32>
    %37 = tpu.iota {dimensions = array<i32: 1>} : vector<27x320xi32>
    %c32_i32 = arith.constant 32 : i32
    %c0_i32 = arith.constant 0 : i32
    %38 = arith.cmpi eq, %c32_i32, %c0_i32 : i32
    %c1_i32 = arith.constant 1 : i32
    %39 = arith.select %38, %c1_i32, %c32_i32 : i32
    %40 = vector.broadcast %39 : i32 to vector<27x320xi32>
    %41 = arith.remsi %37, %40 : vector<27x320xi32>
    %c0_i32_20 = arith.constant 0 : i32
    %42 = vector.broadcast %c0_i32_20 : i32 to vector<27x320xi32>
    %43 = arith.cmpi ne, %41, %42 : vector<27x320xi32>
    %c0_i32_21 = arith.constant 0 : i32
    %44 = vector.broadcast %c0_i32_21 : i32 to vector<27x320xi32>
    %45 = arith.cmpi slt, %41, %44 : vector<27x320xi32>
    %c0_i32_22 = arith.constant 0 : i32
    %46 = arith.cmpi slt, %39, %c0_i32_22 : i32
    %47 = vector.broadcast %46 : i1 to vector<27x320xi1>
    %48 = vector.broadcast %47 : vector<27x320xi1> to vector<27x320xi1>
    %49 = arith.xori %45, %48 : vector<27x320xi1>
    %50 = arith.andi %49, %43 : vector<27x320xi1>
    %51 = vector.broadcast %39 : i32 to vector<27x320xi32>
    %52 = arith.addi %41, %51 : vector<27x320xi32>
    %53 = arith.select %50, %52, %41 : vector<27x320xi1>, vector<27x320xi32>
    %c27_i32 = arith.constant 27 : i32
    %54 = vector.broadcast %c27_i32 : i32 to vector<27x320xi32>
    %55 = arith.cmpi slt, %53, %54 : vector<27x320xi32>
    %cst_23 = arith.constant 0.000000e+00 : f32
    %56 = vector.broadcast %cst_23 : f32 to vector<27x320xf32>
    %57 = arith.select %55, %36, %56 : vector<27x320xi1>, vector<27x320xf32>
    %c0_24 = arith.constant 0 : index
    %c0_25 = arith.constant 0 : index
    %c0_26 = arith.constant 0 : index
    %58 = vector.load %arg4[%c0_24, %c0_25, %c0_26] : memref<1x27x320xf32, #tpu.memory_space<vmem>>, vector<1x27x320xf32>
    %59 = vector.shape_cast %58 : vector<1x27x320xf32> to vector<27x320xf32>
    %60 = vector.shape_cast %57 : vector<27x320xf32> to vector<1x27x320xf32>
    tpu.vector_store %arg4[%c0_24, %c0_25, %c0_26], %60 {strides = array<i32>} : memref<1x27x320xf32, #tpu.memory_space<vmem>>, vector<1x27x320xf32>,
    return
  }
  func.func @transform_0(%arg0: i32) -> (i32, i32, i32) {
    %c0_i32 = arith.constant 0 : i32
    %c0_i32_0 = arith.constant 0 : i32
    %c0_i32_1 = arith.constant 0 : i32
    return %arg0, %c0_i32, %c0_i32_0 : i32, i32, i32
  }
  func.func @transform_1(%arg0: i32) -> (i32, i32, i32) {
    %c0_i32 = arith.constant 0 : i32
    %c0_i32_0 = arith.constant 0 : i32
    %c0_i32_1 = arith.constant 0 : i32
    %c0_i32_2 = arith.constant 0 : i32
    return %c0_i32, %c0_i32_0, %c0_i32_1 : i32, i32, i32
  }
  func.func @transform_2(%arg0: i32) -> (i32, i32) {
    %c0_i32 = arith.constant 0 : i32
    %c0_i32_0 = arith.constant 0 : i32
    %c0_i32_1 = arith.constant 0 : i32
    return %c0_i32, %c0_i32_0 : i32, i32
  }
  func.func @transform_3(%arg0: i32) -> (i32, i32, i32) {
    %c0_i32 = arith.constant 0 : i32
    %c0_i32_0 = arith.constant 0 : i32
    %c0_i32_1 = arith.constant 0 : i32
    return %arg0, %c0_i32, %c0_i32_0 : i32, i32, i32
  }
}

</mosaic_0001>

<bundles_post_ra>
// kernel: tpu_custom_call.1
= control target key start
LH: loop header
LB: loop body
LE: loop exit
PB: predicated region body
PF: predicated region fallthrough
CT: control target
= control target key end

     0   :  { %8 = vsyncpa [#allocation3], 0  ;;  %s3197_s0 = inlined_call_operand.hbm [shape: f32[2,32,32], index: 0, kind: input, shape index: {}]   ;;  %s3198_s1 = inlined_call_operand.hbm [shape: f32[5,32,640], index: 1, kind: input, shape index: {}]   ;;  %s3199_s2 = inlined_call_operand.vmem [shape: f32[1,640], index: 2, kind: input, shape index: {}]   ;;  %s3200_s3 = inlined_call_operand.vmem [shape: f32[2,27,320], index: 3, kind: output, shape index: {}]  }
   0x1   :  { %10 = vsyncpa [#allocation3 + $0x1], 0 }
   0x2   :  { %11 = vsyncpa [#allocation5], 0  ;;  %s2675_s12 = smov 0   ;;  %s2677_s13 = smov 0  }
   0x3   :  { %s2679_s14 = smov 0   ;;  %s2681_s15 = smov 0  }
   0x4 LB: > { %s2694_s16 = sadd.s32 4294967295, %s2645_s15   ;;  %p37_p0 = scmp.ne.s32.totalorder %s2637_s13, %s2633_s12  ;;  %s2645_s15 = sphi %s2681_s15, %s3221_s15   ;;  %s2641_s14 = sphi %s2679_s14, %s3220_s14   ;;  %s2637_s13 = sphi %s2677_s13, %s3219_s13   ;;  %s2633_s12 = sphi %s2675_s12, %s3218_s12  }
   0x5   : > { %p3201_p1 = scmp.eq.s32.totalorder %s2694_s16, 0  ;;  %p2105_p2 = scmp.ge.s32.totalorder %s2645_s15, 1 }
   0x6   : > { %p116_p3 = scmp.lt.s32.totalorder %s2645_s15, 3  ;;  %s2647_s19 = smov [#allocation4]  }
   0x7   : > { %p2702_p4 = por %p3201_p1, %p37_p0  ;;  %s128_s20 = sshll.u32 %s2647_s19, 4  ;;  %s129_s20 = int_to_ptr.vmem [resolvable:$true] %s128_s20 }
   0x8   : > { %p2706_p5 = pnand %p2105_p2, %p116_p3  ;;  %s2719_s22 = sadd.s32 1, %s2645_s15  }
   0x9   : > { %s3204_s17 = scalar_select %p2702_p4, 1, 0 }
   0xa   : > { %s3205_s18 = scalar_select %p2706_p5, 1, 0 }
   0xb   : > { %p2499_p6 = pneg %p2706_p5  ;;  %s24_s23 = sadd.s32 1, %s2641_s14 }
   0xc   : > { %s21_s24 = ssub.s32 %s2645_s15, %s2719_s22  ;;  %s2549_s27 = scalar_lea.hbm %s3198_s1, 12800 }
   0xd   : > { %p2714_p7 = pnand %p2499_p6, %p3201_p1  ;;  %p2550_p8 = scmp.ne.s32.totalorder %s3198_s1, %s2549_s27 }
   0xe   : > { %p2556_p12 = scmp.lt.u32.totalorder %s2549_s27, %s3198_s1 }
   0xf   : > { %p2551_p9 = pneg %p2714_p7 }
  0x11   : > { %p2552_p10 = pnand %p2551_p9, %p2550_p8 }
  0x13   : > { %p2553_p11 = pneg %p2552_p10 }
  0x15   : > { %p2558_p13 = pnand %p2556_p12, %p2553_p11 }
  0x17   : > { %2561 = shalt.err (!%p2558_p13)
}
  0x18   : > { %s2562_s5 = scalar_lea.vmem %s129_s20, 12800  ;;  %p2570_p6 = scmp.lt.s32.totalorder %s129_s20, %s129_s20 }
  0x19   : > { %p2563_p0 = scmp.ne.s32.totalorder %s129_s20, %s2562_s5  ;;  %p2571_p1 = scmp.lt.s32.totalorder %s2562_s5, %s2562_s5 }
  0x1b   : > { %p2565_p2 = pnand %p2563_p0, %p2551_p9  ;;  %p2572_p4 = por %p2571_p1, %p2570_p6 }
  0x1d   : > { %p2566_p3 = pneg %p2565_p2 }
  0x1f   : > { %p2573_p5 = pnand %p2572_p4, %p2566_p3 }
  0x21   : > { %2576 = shalt.err (!%p2573_p5)
}
  0x22   : > { %s2648_s6 = smov 640   ;;  %s2649_s7 = smov 40  }
  0x23   : > { %2502 = dma.hbm_to_vmem [thread:$0]  (!%p2714_p7), %s3198_s1, 12800, %s129_s20, [#allocation5], %s2648_s6, %s2648_s6, %s2649_s7  }
  0x24   : > { %p22_p8 = scmp.eq.s32.totalorder %s21_s24, 0  ;;  %p31_p9 = scmp.ne.s32.totalorder %s2641_s14, %s2637_s13 }
  0x25   : > { %p32_p1 = scmp.eq.s32.totalorder %s2645_s15, 0  ;;  %p2508_p4 = scmp.lt.s32.totalorder %s2645_s15, 2 }
  0x26   : > { %s2745_s10 = scalar_select %p22_p8, %s2641_s14, %s24_s23  }
  0x27   : > { %p33_p5 = por %p32_p1, %p31_p9  ;;  %s145_s11 = sand.u32 1, %s2641_s14  }
  0x28   : > { %s2108_s12 = sshll.u32 %s145_s11, 5  ;;  %s2177_s19 = sshll.u32 %s2645_s15, 9 }
  0x29   : > { %s2752_s27 = scalar_lea.hbm %s3197_s0, %s2177_s19  ;;  %s149_s20 = scalar_lea.vmem [#allocation2], %s2108_s12 }
  0x2a   : > { %s156_s21 = sshll.u32 %s149_s20, 4  ;;  %p2756_p7 = pnand %p2508_p4, %p33_p5  ;;  %s2754_s21 = int_to_ptr.vmem [resolvable:$true] %s156_s21 }
  0x2b   : > { %s2760_s15 = scalar_lea.sflag [#allocation3], %s145_s11  ;;  %s2577_s24 = scalar_lea.hbm %s2752_s27, 512 }
  0x2c   : > { %p2578_p10 = scmp.ne.s32.totalorder %s2752_s27, %s2577_s24  ;;  %p2579_p11 = pneg %p2756_p7 }
  0x2d   : > { %s2582_s30 = scalar_lea.hbm %s3197_s0, 1024  ;;  %p2583_p0 = scmp.lt.u32.totalorder %s2752_s27, %s3197_s0 }
  0x2e   : > { %p2580_p12 = pnand %p2579_p11, %p2578_p10  ;;  %p2584_p2 = scmp.lt.u32.totalorder %s2582_s30, %s2577_s24 }
  0x2f   : > { %p2586_p6 = scmp.lt.u32.totalorder %s2577_s24, %s2752_s27 }
  0x30   : > { %p2581_p13 = pneg %p2580_p12  ;;  %p2585_p3 = por %p2584_p2, %p2583_p0 }
  0x32   : > { %p2587_p8 = por %p2586_p6, %p2585_p3 }
  0x34   : > { %p2588_p9 = pnand %p2587_p8, %p2581_p13 }
  0x36   : > { %2591 = shalt.err (!%p2588_p9)
}
  0x37   : > { %s2592_s6 = scalar_lea.vmem %s2754_s21, 512  ;;  %s2650_s7 = smov [#allocation2]  }
  0x38   : > { %p2593_p1 = scmp.ne.s32.totalorder %s2754_s21, %s2592_s6  ;;  %s2597_s8 = sshll.u32 %s2650_s7, 4  ;;  %s2598_s8 = int_to_ptr.vmem [resolvable:$false] %s2597_s8 }
  0x39   : > { %s2599_s9 = scalar_lea.vmem %s2598_s8, 1024  ;;  %p2600_p10 = scmp.lt.s32.totalorder %s2754_s21, %s2598_s8 }
  0x3a   : > { %p2595_p4 = pnand %p2593_p1, %p2579_p11  ;;  %p2601_p12 = scmp.lt.s32.totalorder %s2599_s9, %s2592_s6 }
  0x3c   : > { %p2596_p5 = pneg %p2595_p4  ;;  %p2602_p0 = por %p2601_p12, %p2600_p10 }
  0x3e   : > { %p2603_p2 = pnand %p2602_p0, %p2596_p5 }
  0x40   : > { %2606 = shalt.err (!%p2603_p2)
}
  0x41   : > { %s2651_s11 = smov 128   ;;  %s2652_s12 = smov 8  }
  0x42   : > { %2506 = dma.hbm_to_vmem [thread:$0]  (!%p2756_p7), %s2752_s27, 512, %s2754_s21, %s2760_s15, %s2651_s11, %s2651_s11, %s2652_s12  }
  0x43   : > { %p3208_p11 = scmp.ne.s32.totalorder %s3205_s18, 0 }
  0x44   : > { %s170_s19 = sand.u32 (!%p3208_p11), 1, %s2637_s13   ;;  %p3209_p13 = scmp.ne.s32.totalorder (!%p3208_p11), %s3204_s17, 0 }
  0x45   : > { %168 = sbr.rel (%p3208_p11) target bundleno = 539 (0x21b), region = 32  ;;  %s2112_s25 = sshll.u32 (!%p3208_p11), %s170_s19, 5 }
  0x46   : > { %s171_s26 = scalar_lea.sflag (!%p3208_p11), [#allocation3], %s170_s19  ;;  %s2791_s20 = scalar_lea.vmem (!%p3208_p11), [#allocation2], %s2112_s25 }
  0x4c   : > { %2624 = dma.done.wait (%p3209_p13), %s171_s26, 512  }
  0x4d   : > { %2626 = vsyncadd (%p3209_p13), %s171_s26, 4294966784  ;;  %p3210_p3 = scmp.eq.s32.totalorder %s2694_s16, 0 }
  0x4f   : > { %2628 = dma.done.wait (%p3210_p3), [#allocation5], 12800   ;;  %p3211_p7 = pmov %p3210_p3 }
  0x50   : > { %v2653_v0 = vmov 0.0   ;;  %v232_v1 = vld [vmem:[#allocation4 + $0xa8] sm:$0xff]  ;;  %v237_v2 = vld [vmem:[#allocation4 + $0xd0] sm:$0xff]  ;;  %v235_v3 = vld [vmem:[#allocation4 + $0xc0] sm:$0xff]  ;;  %vm255_vm0 = vcmask 1046528   ;;  %vm263_vm1 = vcmask 261120  }
  0x51   : > { %2630 = vsyncadd (%p3211_p7), [#allocation5], 4294954496  ;;  %336 = vmatprep.mubr.f32.mxu1 %v2653_v0  ;;  %v2288_v4 = vpack.c.bf16 %v237_v2, %v232_v1  ;;  %v240_v5 = vld [vmem:[#allocation4 + $0xe8] sm:$0xff]  ;;  %v231_v6 = vld [vmem:[#allocation4 + $0xa0] sm:$0xff]  ;;  %vm1467_vm2 = vcmask 1043456   ;;  %vm827_vm3 = vcmask 1045504  }
  0x52   : > { %v236_v7 = vld [vmem:[#allocation4 + $0xc8] sm:$0xff]  ;;  %v2304_v8 = vpack.c.bf16 %v240_v5, %v235_v3  ;;  %v242_v10 = vld [vmem:[#allocation4 + $0xf8] sm:$0xff]  ;;  %v247_v11 = vld [vmem:[#allocation4 + $0x120] sm:$0xff]  ;;  %vm1147_vm4 = vcmask 1044480   ;;  %s2654_s27 = smov 64   ;;  %vm1869_vm5 = vcmask 523264  }
  0x53   : > { %v2290_v9 = vpack.c.bf16 %v236_v7, %v231_v6  ;;  %v245_v12 = vld [vmem:[#allocation4 + $0x110] sm:$0xff]  ;;  %2289 = vmatprep.subr.bf16.mxu1 %v2288_v4  ;;  %v2292_v13 = vpack.c.bf16 %v247_v11, %v242_v10  ;;  %v250_v14 = vld [vmem:[#allocation4 + $0x138] sm:$0xff]  ;;  %v2803_v19 = vld [vmem:[%s2791_s20] sm:$0xff]  ;;  %p201_p6 = scmp.lt.s32.totalorder %s2694_s16, 1  ;;  %vm2025_vm9 = vcmask 518144  }
  0x54   : > { %v241_v15 = vld [vmem:[#allocation4 + $0xf0] sm:$0xff]  ;;  %v246_v16 = vld [vmem:[#allocation4 + $0x118] sm:$0xff]  ;;  %2305 = vmatprep.subr.bf16.mxu0 %v2304_v8  ;;  %v2308_v17 = vpack.c.bf16 %v250_v14, %v245_v12  ;;  %v2806_v20 = vld [vmem:[%s2791_s20 + $0x8] sm:$0xff]  ;;  %v256_v22 = vrot.slane %v2803_v19, 1  ;;  %v1468_v56 = vrot.slane %v2803_v19, 4 }
  0x55   : > { %2291 = vmatpush1.bf16.msra.mxu1 %v2290_v9  ;;  %v2294_v18 = vpack.c.bf16 %v246_v16, %v241_v15  ;;  %v234_v21 = vld [vmem:[#allocation4 + $0xb8] sm:$0xff]  ;;  %2307 = vmatpush3.bf16.msra.mxu0 %v2304_v8  ;;  %v257_v23 = vrot.slane %v2806_v20, 1  ;;  %v239_v24 = vld [vmem:[#allocation4 + $0xe0] sm:$0xff]  ;;  %v2811_v25 = vld [vmem:[%s2791_s20 + $0x10] sm:$0xff]  ;;  %v1469_v58 = vrot.slane %v2806_v20, 4  ;;  %s3223_s16 = smov (!%p201_p6, %s2694_s16), 1 }
  0x56   : > { %2293 = vmatprep.subr.bf16.mxu1 %v2292_v13  ;;  %v211_v26 = vld [vmem:[#allocation4 + $0x8] sm:$0xff]  ;;  %2309 = vmatprep.subr.bf16.mxu0 %v2308_v17  ;;  %v2296_v27 = vpack.c.bf16 %v239_v24, %v234_v21  ;;  %v259_v28 = vrot.slane %v2811_v25, 1  ;;  %v216_v29 = vld [vmem:[#allocation4 + $0x30] sm:$0xff]  ;;  %v238_v31 = vld [vmem:[#allocation4 + $0xd8] sm:$0xff]  ;;  %v1471_v59 = vrot.slane %v2811_v25, 4  ;;  %s2492_s21 = smul.u32 96, %s3223_s16 }
  0x57   : > { %v233_v30 = vld [vmem:[#allocation4 + $0xb0] sm:$0xff]  ;;  %v2815_v32 = vsel %vm255_vm0, %v256_v22, %v257_v23  ;;  %v2312_v33 = vpack.c.bf16 %v216_v29, %v211_v26  ;;  %v210_v34 = vld [vmem:[#allocation4] sm:$0xff]  ;;  %v215_v35 = vld [vmem:[#allocation4 + $0x28] sm:$0xff]  ;;  %v2848_v3 = vsel %vm1467_vm2, %v1468_v56, %v1469_v58 }
  0x58   : > { %v2818_v36 = vld [vmem:[%s2791_s20 + $0x18] sm:$0xff]  ;;  %2226 = vmatprep.mubr.msk.f32.mxu0 %vm263_vm1, %v2815_v32  ;;  %v2298_v37 = vpack.c.bf16 %v238_v31, %v233_v30  ;;  %v226_v40 = vld [vmem:[#allocation4 + $0x80] sm:$0xff]  ;;  %v2826_v41 = vsel %vm255_vm0, %v257_v23, %v259_v28  ;;  %v2314_v42 = vpack.c.bf16 %v215_v35, %v210_v34  ;;  %v244_v43 = vld [vmem:[#allocation4 + $0x108] sm:$0xff]  ;;  %v2851_v4 = vsel %vm1467_vm2, %v1469_v58, %v1471_v59  ;;  %s3107_s15 = scalar_lea.vmem %s3200_s3, %s2492_s21 }
  0x59   : > { %2295 = vmatpush1.bf16.msra.mxu1 %v2294_v18  ;;  %v2823_v38 = vrot.slane %v2818_v36, 1  ;;  %v221_v39 = vld [vmem:[#allocation4 + $0x58] sm:$0xff]  ;;  %2311 = vmatpush3.bf16.msra.mxu0 %v2308_v17  ;;  %v249_v44 = vld [vmem:[#allocation4 + $0x130] sm:$0xff]  ;;  %v243_v48 = vld [vmem:[#allocation4 + $0x100] sm:$0xff]  ;;  %v2843_v62 = vrot.slane %v2818_v36, 4  ;;  %v2909_v58 = vrot.slane %v2818_v36, 2 }
  0x5a   : > { %2297 = vmatprep.subr.bf16.mxu1 %v2296_v27  ;;  %2313 = vmatprep.subr.bf16.mxu0 %v2312_v33  ;;  %v2316_v45 = vpack.c.bf16 %v226_v40, %v221_v39  ;;  %v220_v46 = vld [vmem:[#allocation4 + $0x50] sm:$0xff]  ;;  %v225_v47 = vld [vmem:[#allocation4 + $0x78] sm:$0xff]  ;;  %v2300_v50 = vpack.c.bf16 %v249_v44, %v244_v43  ;;  %v248_v51 = vld [vmem:[#allocation4 + $0x128] sm:$0xff]  ;;  %v829_v39 = vrot.slane %v2806_v20, 2 }
  0x5b   : > { %v2832_v49 = vsel %vm255_vm0, %v259_v28, %v2823_v38  ;;  %v214_v52 = vld [vmem:[#allocation4 + $0x20] sm:$0xff]  ;;  %v219_v53 = vld [vmem:[#allocation4 + $0x48] sm:$0xff]  ;;  %v213_v54 = vld [vmem:[#allocation4 + $0x18] sm:$0xff]  ;;  %v2318_v57 = vpack.c.bf16 %v225_v47, %v220_v46  ;;  %v2302_v60 = vpack.c.bf16 %v248_v51, %v243_v48  ;;  %v2858_v5 = vsel %vm1467_vm2, %v1471_v59, %v2843_v62 }
  0x5c   : > { %2115 = vmatmul.mubr.msk.f32.vlgmr.msra.gmra.mrb[0].mxu1 %vm263_vm1, %v2815_v32  ;;  %2227 = vmatmul.mubr.msk.f32.vlgmr.msra.gmra.mrb[0].mxu0 %vm263_vm1, %v2826_v41  ;;  %v218_v55 = vld [vmem:[#allocation4 + $0x40] sm:$0xff]  ;;  %v2328_v61 = vpack.c.bf16 %v219_v53, %v214_v52  ;;  %v224_v1 = vld [vmem:[#allocation4 + $0x70] sm:$0xff]  ;;  %v229_v2 = vld [vmem:[#allocation4 + $0x98] sm:$0xff] }
  0x5d   : > { %2299 = vmatpush1.bf16.msra.mxu1 %v2298_v37  ;;  %2315 = vmatpush1.bf16.msra.mxu0 %v2314_v42  ;;  %v2320_v63 = vpack.c.bf16 %v218_v55, %v213_v54  ;;  %v2332_v6 = vpack.c.bf16 %v229_v2, %v224_v1  ;;  %v808_v7 = vld [vmem:[#allocation4 + $0x148] sm:$0xff]  ;;  %v813_v8 = vld [vmem:[#allocation4 + $0x170] sm:$0xff]  ;;  %v217_v10 = vld [vmem:[#allocation4 + $0x38] sm:$0xff]  ;;  %v828_v37 = vrot.slane %v2803_v19, 2 }
  0x5e   : > { %342 = vmatprep.mubr.f32.mxu1 %v2653_v0  ;;  %2229 = vmatprep.mubr.msk.f32.mxu0 %vm263_vm1, %v2832_v49  ;;  %v212_v9 = vld [vmem:[#allocation4 + $0x10] sm:$0xff]  ;;  %v2336_v11 = vpack.c.bf16 %v813_v8, %v808_v7  ;;  %v223_v12 = vld [vmem:[#allocation4 + $0x68] sm:$0xff]  ;;  %v222_v16 = vld [vmem:[#allocation4 + $0x60] sm:$0xff] }
  0x5f   : > { %2317 = vmatprep.subr.bf16.mxu0 %v2316_v45  ;;  %2301 = vmatprep.subr.bf16.mxu1 %v2300_v50  ;;  %v228_v13 = vld [vmem:[#allocation4 + $0x90] sm:$0xff]  ;;  %v2322_v14 = vpack.c.bf16 %v217_v10, %v212_v9  ;;  %v227_v17 = vld [vmem:[#allocation4 + $0x88] sm:$0xff]  ;;  %v810_v18 = vld [vmem:[#allocation4 + $0x158] sm:$0xff]  ;;  %v830_v48 = vsel %vm827_vm3, %v828_v37, %v829_v39 }
  0x60   : > { %2116 = vmatmul.mubr.msk.f32.gmra.mrb[2].mxu1 %vm263_vm1, %v2826_v41  ;;  %2230 = vmatmul.mubr.msk.f32.gmra.mrb[2].mxu0 %vm263_vm1, %v2823_v38  ;;  %v2324_v15 = vpack.c.bf16 %v228_v13, %v223_v12  ;;  %v815_v21 = vld [vmem:[#allocation4 + $0x180] sm:$0xff]  ;;  %v2326_v22 = vpack.c.bf16 %v227_v17, %v222_v16  ;;  %v812_v24 = vld [vmem:[#allocation4 + $0x168] sm:$0xff]  ;;  %v818_v27 = vld [vmem:[#allocation4 + $0x198] sm:$0xff] }
  0x61   : > { %348 = vmatprep.mubr.f32.mxu1 %v2653_v0  ;;  %2319 = vmatpush1.bf16.msra.mxu0 %v2318_v57  ;;  %v807_v23 = vld [vmem:[#allocation4 + $0x140] sm:$0xff]  ;;  %v2344_v26 = vpack.c.bf16 %v815_v21, %v810_v18  ;;  %v817_v31 = vld [vmem:[#allocation4 + $0x190] sm:$0xff]  ;;  %v816_v34 = vld [vmem:[#allocation4 + $0x188] sm:$0xff] }
  0x62   : > { %607 = vmatprep.mubr.f32.mxu0 %v2653_v0  ;;  %2303 = vmatpush1.bf16.msra.mxu1 %v2302_v60  ;;  %v823_v28 = vld [vmem:[#allocation4 + $0x1c0] sm:$0xff]  ;;  %v2338_v29 = vpack.c.bf16 %v812_v24, %v807_v23  ;;  %v809_v40 = vld [vmem:[#allocation4 + $0x150] sm:$0xff]  ;;  %v820_v43 = vld [vmem:[#allocation4 + $0x1a8] sm:$0xff] }
  0x63   : > { %2329 = vmatprep.subr.bf16.mxu0 %v2328_v61  ;;  %2321 = vmatprep.subr.bf16.mxu1 %v2320_v63  ;;  %v2340_v30 = vpack.c.bf16 %v823_v28, %v818_v27  ;;  %v811_v33 = vld [vmem:[#allocation4 + $0x160] sm:$0xff]  ;;  %v825_v44 = vld [vmem:[#allocation4 + $0x1d0] sm:$0xff]  ;;  %v826_v47 = vld [vmem:[#allocation4 + $0x1d8] sm:$0xff]  ;;  %v1148_v28 = vrot.slane %v2803_v19, 3 }
  0x64   : > { %2117 = vmatmul.mubr.msk.f32.gmra.mrb[4].mxu1 %vm263_vm1, %v2832_v49  ;;  %2127 = vmatmul.mubr.msk.f32.vlgmr.msra.gmra.mrb[4].mxu0 %vm263_vm1, %v2803_v19  ;;  %v2352_v42 = vpack.c.bf16 %v816_v34, %v811_v33  ;;  %v821_v46 = vld [vmem:[#allocation4 + $0x1b0] sm:$0xff]  ;;  %v2348_v50 = vpack.c.bf16 %v825_v44, %v820_v43  ;;  %v824_v51 = vld [vmem:[#allocation4 + $0x1c8] sm:$0xff]  ;;  %v1130_v53 = vld [vmem:[#allocation4 + $0x1f8] sm:$0xff] }
  0x65   : > { %354 = vmatprep.mubr.f32.mxu1 %v2653_v0  ;;  %2331 = vmatpush3.bf16.msra.mxu0 %v2328_v61  ;;  %v2356_v52 = vpack.c.bf16 %v826_v47, %v821_v46  ;;  %v1135_v54 = vld [vmem:[#allocation4 + $0x220] sm:$0xff]  ;;  %v1128_v55 = vld [vmem:[#allocation4 + $0x1e8] sm:$0xff]  ;;  %v1133_v56 = vld [vmem:[#allocation4 + $0x210] sm:$0xff] }
  0x66   : > { %613 = vmatprep.mubr.f32.mxu0 %v2653_v0  ;;  %2333 = vmatprep.subr.bf16.mxu0 %v2332_v6  ;;  %v2368_v60 = vpack.c.bf16 %v1135_v54, %v1130_v53  ;;  %v2360_v61 = vpack.c.bf16 %v1133_v56, %v1128_v55  ;;  %v1129_v1 = vld [vmem:[#allocation4 + $0x1f0] sm:$0xff]  ;;  %v1134_v2 = vld [vmem:[#allocation4 + $0x218] sm:$0xff]  ;;  %v1132_v7 = vld [vmem:[#allocation4 + $0x208] sm:$0xff] }
  0x67   : > { %v1138_v8 = vld [vmem:[#allocation4 + $0x238] sm:$0xff]  ;;  %v1143_v9 = vld [vmem:[#allocation4 + $0x260] sm:$0xff]  ;;  %v2370_v10 = vpack.c.bf16 %v1134_v2, %v1129_v1  ;;  %v1145_v12 = vld [vmem:[#allocation4 + $0x270] sm:$0xff] }
  0x68   : > { %2118 = vmatmul.mubr.msk.f32.gmra.mrb[6].mxu1 %vm263_vm1, %v2823_v38  ;;  %2128 = vmatmul.mubr.msk.f32.gmra.mrb[6].mxu0 %vm263_vm1, %v2806_v20  ;;  %v1142_v16 = vld [vmem:[#allocation4 + $0x258] sm:$0xff]  ;;  %v1139_v17 = vld [vmem:[#allocation4 + $0x240] sm:$0xff]  ;;  %v1144_v21 = vld [vmem:[#allocation4 + $0x268] sm:$0xff] }
  0x69   : > { %425 = vmatprep.mubr.f32.mxu1 %v2653_v0  ;;  %619 = vmatprep.mubr.f32.mxu0 %v2653_v0  ;;  %v1136_v23 = vld [vmem:[#allocation4 + $0x228] sm:$0xff]  ;;  %v1450_v24 = vld [vmem:[#allocation4 + $0x298] sm:$0xff]  ;;  %v1141_v33 = vld [vmem:[#allocation4 + $0x250] sm:$0xff] }
  0x6a   : > { %2335 = vmatpush3.bf16.msra.mxu0 %v2332_v6  ;;  %v1127_v6 = vld [vmem:[#allocation4 + $0x1e0] sm:$0xff]  ;;  %v1146_v34 = vld [vmem:[#allocation4 + $0x278] sm:$0xff]  ;;  %v1448_v37 = vld [vmem:[#allocation4 + $0x288] sm:$0xff] }
  0x6b   : > { %2337 = vmatprep.subr.bf16.mxu0 %v2336_v11  ;;  %v1140_v11 = vld [vmem:[#allocation4 + $0x248] sm:$0xff]  ;;  %v2362_v13 = vpack.c.bf16 %v1132_v7, %v1127_v6  ;;  %v1458_v55 = vld [vmem:[#allocation4 + $0x2d8] sm:$0xff]  ;;  %v1463_v56 = vld [vmem:[#allocation4 + $0x300] sm:$0xff]  ;;  %v1768_v6 = vlaneseq }
  0x6c   : > { %2119 = vmatmul.mubr.msk.f32.vlgmr.msra.gmra.mrb[8].mxu1 %vm263_vm1, %v2815_v32  ;;  %2129 = vmatmul.mubr.msk.f32.gmra.mrb[8].mxu0 %vm263_vm1, %v2811_v25  ;;  %v822_v32 = vld [vmem:[#allocation4 + $0x1b8] sm:$0xff]  ;;  %v2372_v18 = vpack.c.bf16 %v1145_v12, %v1140_v11  ;;  %v1460_v44 = vld [vmem:[#allocation4 + $0x2e8] sm:$0xff] }
  0x6d   : > { %2323 = vmatpush1.bf16.msra.mxu1 %v2322_v14  ;;  %431 = vmatprep.mubr.f32.mxu1 %v2653_v0  ;;  %v2342_v35 = vpack.c.bf16 %v822_v32, %v817_v31  ;;  %v2364_v14 = vpack.c.bf16 %v1143_v9, %v1138_v8  ;;  %v1452_v53 = vld [vmem:[#allocation4 + $0x2a8] sm:$0xff]  ;;  %v1466_v1 = vld [vmem:[#allocation4 + $0x318] sm:$0xff]  ;;  %v3008_v8 = vld [vmem:[%s3199_s2] sm:$0x1f] }
  0x6e   : > { %625 = vmatprep.mubr.f32.mxu0 %v2653_v0  ;;  %2325 = vmatprep.subr.bf16.mxu1 %v2324_v15  ;;  %v1137_v15 = vld [vmem:[#allocation4 + $0x230] sm:$0xff] }
  0x6f   : > { %v2366_v27 = vpack.c.bf16 %v1142_v16, %v1137_v15 }
  0x70   : > { %2120 = vmatmul.mubr.msk.f32.gmra.mrb[10].mxu1 %vm263_vm1, %v2826_v41  ;;  %2130 = vmatmul.mubr.msk.f32.gmra.mrb[10].mxu0 %vm263_vm1, %v2818_v36  ;;  %v814_v41 = vld [vmem:[#allocation4 + $0x178] sm:$0xff] }
  0x71   : > { %437 = vmatprep.mubr.f32.mxu1 %v2653_v0  ;;  %2240 = vmatprep.mubr.msk.f32.mxu0 %vm263_vm1, %v2803_v19  ;;  %v2346_v45 = vpack.c.bf16 %v814_v41, %v809_v40  ;;  %v1153_v41 = vrot.slane %v2818_v36, 3 }
  0x72   : > { %2327 = vmatpush1.bf16.msra.mxu1 %v2326_v22  ;;  %v1131_v22 = vld [vmem:[#allocation4 + $0x200] sm:$0xff] }
  0x73   : > { %2345 = vmatprep.subr.bf16.mxu1 %v2344_v26  ;;  %v1455_v26 = vld [vmem:[#allocation4 + $0x2c0] sm:$0xff]  ;;  %v2376_v31 = vpack.c.bf16 %v1136_v23, %v1131_v22 }
  0x74   : > { %2121 = vmatmul.mubr.msk.f32.gmra.mrb[12].mxu1 %vm263_vm1, %v2832_v49  ;;  %2241 = vmatmul.mubr.msk.f32.vlgmr.msra.gmra.mrb[0].mxu0 %vm263_vm1, %v2806_v20  ;;  %v831_v49 = vrot.slane %v2811_v25, 2  ;;  %v2392_v32 = vpack.c.bf16 %v1455_v26, %v1450_v24 }
  0x75   : > { %443 = vmatprep.mubr.f32.mxu1 %v2653_v0  ;;  %2339 = vmatpush1.bf16.msra.mxu0 %v2338_v29  ;;  %v1149_v29 = vrot.slane %v2806_v20, 3 }
  0x76   : > { %2243 = vmatprep.mubr.msk.f32.mxu0 %vm263_vm1, %v2811_v25  ;;  %2341 = vmatprep.subr.bf16.mxu0 %v2340_v30  ;;  %v832_v57 = vsel %vm827_vm3, %v829_v39, %v831_v49  ;;  %v834_v63 = vsel %vm827_vm3, %v831_v49, %v2909_v58  ;;  %v2374_v30 = vpack.c.bf16 %v1144_v21, %v1139_v17  ;;  %v1453_v39 = vld [vmem:[#allocation4 + $0x2b0] sm:$0xff]  ;;  %v1464_v49 = vld [vmem:[#allocation4 + $0x308] sm:$0xff] }
  0x77   : > { %v2384_v43 = vpack.c.bf16 %v1453_v39, %v1448_v37 }
  0x78   : > { %2122 = vmatmul.mubr.msk.f32.gmra.mrb[14].mxu1 %vm263_vm1, %v2823_v38  ;;  %2244 = vmatmul.mubr.msk.f32.gmra.mrb[2].mxu0 %vm263_vm1, %v2818_v36  ;;  %v819_v38 = vld [vmem:[#allocation4 + $0x1a0] sm:$0xff] }
  0x79   : > { %696 = vmatprep.mubr.f32.mxu1 %v2653_v0  ;;  %2343 = vmatpush1.bf16.msra.mxu0 %v2342_v35  ;;  %v2350_v59 = vpack.c.bf16 %v824_v51, %v819_v38  ;;  %v2380_v35 = vpack.c.bf16 %v1146_v34, %v1141_v33  ;;  %v1456_v38 = vld [vmem:[#allocation4 + $0x2c8] sm:$0xff] }
  0x7a   : > { %907 = vmatprep.mubr.f32.mxu0 %v2653_v0  ;;  %2353 = vmatprep.subr.bf16.mxu0 %v2352_v42 }
  0x7c   : > { %2131 = vmatmul.mubr.msk.f32.vlgmr.msra.gmra.mrb[8].mxu1 %vm263_vm1, %v2803_v19  ;;  %2139 = vmatmul.mubr.msk.f32.vlgmr.msra.gmra.mrb[4].mxu0 %vm263_vm1, %v830_v48  ;;  %v1150_v19 = vsel %vm1147_vm4, %v1148_v28, %v1149_v29 }
  0x7d   : > { %2347 = vmatpush1.bf16.msra.mxu1 %v2346_v45  ;;  %2355 = vmatpush3.bf16.msra.mxu0 %v2352_v42  ;;  %v1454_v42 = vld [vmem:[#allocation4 + $0x2b8] sm:$0xff]  ;;  %v1465_v45 = vld [vmem:[#allocation4 + $0x310] sm:$0xff] }
  0x7e   : > { %702 = vmatprep.mubr.f32.mxu1 %v2653_v0  ;;  %913 = vmatprep.mubr.f32.mxu0 %v2653_v0 }
  0x7f   : > { %2349 = vmatprep.subr.bf16.mxu1 %v2348_v50  ;;  %2357 = vmatprep.subr.bf16.mxu0 %v2356_v52  ;;  %v1451_v50 = vld [vmem:[#allocation4 + $0x2a0] sm:$0xff] }
  0x80   : > { %2132 = vmatmul.mubr.msk.f32.gmra.mrb[10].mxu1 %vm263_vm1, %v2806_v20  ;;  %2140 = vmatmul.mubr.msk.f32.gmra.mrb[6].mxu0 %vm263_vm1, %v832_v57  ;;  %v1151_v20 = vrot.slane %v2811_v25, 3  ;;  %v2400_v54 = vpack.c.bf16 %v1456_v38, %v1451_v50 }
  0x81   : > { %708 = vmatprep.mubr.f32.mxu1 %v2653_v0  ;;  %919 = vmatprep.mubr.f32.mxu0 %v2653_v0 }
  0x82   : > { %2351 = vmatpush1.bf16.msra.mxu1 %v2350_v59  ;;  %2359 = vmatpush3.bf16.msra.mxu0 %v2356_v52  ;;  %v1152_v40 = vsel %vm1147_vm4, %v1149_v29, %v1151_v20  ;;  %v1154_v47 = vsel %vm1147_vm4, %v1151_v20, %v1153_v41  ;;  %v1447_v52 = vld [vmem:[#allocation4 + $0x280] sm:$0xff]  ;;  %v1457_v59 = vld [vmem:[#allocation4 + $0x2d0] sm:$0xff] }
  0x83   : > { %2369 = vmatprep.subr.bf16.mxu1 %v2368_v60  ;;  %2361 = vmatprep.subr.bf16.mxu0 %v2360_v61  ;;  %v1462_v60 = vld [vmem:[#allocation4 + $0x2f8] sm:$0xff] }
  0x84   : > { %2133 = vmatmul.mubr.msk.f32.gmra.mrb[12].mxu1 %vm263_vm1, %v2811_v25  ;;  %2141 = vmatmul.mubr.msk.f32.gmra.mrb[8].mxu0 %vm263_vm1, %v834_v63  ;;  %v1449_v25 = vld [vmem:[#allocation4 + $0x290] sm:$0xff]  ;;  %v2390_v61 = vpack.c.bf16 %v1462_v60, %v1457_v59 }
  0x85   : > { %714 = vmatprep.mubr.f32.mxu1 %v2653_v0  ;;  %925 = vmatprep.mubr.f32.mxu0 %v2653_v0  ;;  %v2394_v46 = vpack.c.bf16 %v1454_v42, %v1449_v25 }
  0x88   : > { %2134 = vmatmul.mubr.msk.f32.gmra.mrb[14].mxu1 %vm263_vm1, %v2818_v36  ;;  %2142 = vmatmul.mubr.msk.f32.gmra.mrb[10].mxu0 %vm263_vm1, %v2909_v58  ;;  %v2396_v36 = vpack.c.bf16 %v1465_v45, %v1460_v44 }
  0x89   : > { %996 = vmatprep.mubr.f32.mxu1 %v2653_v0  ;;  %2254 = vmatprep.mubr.msk.f32.mxu0 %vm263_vm1, %v830_v48 }
  0x8c   : > { %2143 = vmatmul.mubr.msk.f32.vlgmr.msra.gmra.mrb[8].mxu1 %vm263_vm1, %v830_v48  ;;  %2255 = vmatmul.mubr.msk.f32.vlgmr.msra.gmra.mrb[0].mxu0 %vm263_vm1, %v832_v57  ;;  %v1459_v48 = vld [vmem:[#allocation4 + $0x2e0] sm:$0xff] }
  0x8d   : > { %2371 = vmatpush1.bf16.msra.mxu1 %v2370_v10  ;;  %2363 = vmatpush1.bf16.msra.mxu0 %v2362_v13  ;;  %v2398_v51 = vpack.c.bf16 %v1464_v49, %v1459_v48 }
  0x8e   : > { %1002 = vmatprep.mubr.f32.mxu1 %v2653_v0  ;;  %2257 = vmatprep.mubr.msk.f32.mxu0 %vm263_vm1, %v834_v63 }
  0x8f   : > { %2365 = vmatprep.subr.bf16.mxu0 %v2364_v14  ;;  %2373 = vmatprep.subr.bf16.mxu1 %v2372_v18 }
  0x90   : > { %2144 = vmatmul.mubr.msk.f32.gmra.mrb[10].mxu1 %vm263_vm1, %v832_v57  ;;  %2258 = vmatmul.mubr.msk.f32.gmra.mrb[2].mxu0 %vm263_vm1, %v2909_v58  ;;  %v2386_v57 = vpack.c.bf16 %v1452_v53, %v1447_v52 }
  0x91   : > { %1008 = vmatprep.mubr.f32.mxu1 %v2653_v0  ;;  %2367 = vmatpush1.bf16.msra.mxu0 %v2366_v27 }
  0x92   : > { %1227 = vmatprep.mubr.f32.mxu0 %v2653_v0  ;;  %2375 = vmatpush1.bf16.msra.mxu1 %v2374_v30 }
  0x93   : > { %2377 = vmatprep.subr.bf16.mxu0 %v2376_v31  ;;  %2393 = vmatprep.subr.bf16.mxu1 %v2392_v32 }
  0x94   : > { %2145 = vmatmul.mubr.msk.f32.gmra.mrb[12].mxu1 %vm263_vm1, %v834_v63  ;;  %2151 = vmatmul.mubr.msk.f32.vlgmr.msra.gmra.mrb[4].mxu0 %vm263_vm1, %v1150_v19  ;;  %v1461_v63 = vld [vmem:[#allocation4 + $0x2f0] sm:$0xff] }
  0x95   : > { %1014 = vmatprep.mubr.f32.mxu1 %v2653_v0  ;;  %2379 = vmatpush3.bf16.msra.mxu0 %v2376_v31  ;;  %v2404_v2 = vpack.c.bf16 %v1466_v1, %v1461_v63 }
  0x96   : > { %1233 = vmatprep.mubr.f32.mxu0 %v2653_v0  ;;  %2381 = vmatprep.subr.bf16.mxu0 %v2380_v35 }
  0x98   : > { %2146 = vmatmul.mubr.msk.f32.gmra.mrb[14].mxu1 %vm263_vm1, %v2909_v58  ;;  %2152 = vmatmul.mubr.msk.f32.gmra.mrb[6].mxu0 %vm263_vm1, %v1152_v40  ;;  %v2388_v58 = vpack.c.bf16 %v1463_v56, %v1458_v55 }
  0x99   : > { %1316 = vmatprep.mubr.f32.mxu1 %v2653_v0  ;;  %1239 = vmatprep.mubr.f32.mxu0 %v2653_v0 }
  0x9a   : > { %2383 = vmatpush3.bf16.msra.mxu0 %v2380_v35 }
  0x9b   : > { %2385 = vmatprep.subr.bf16.mxu0 %v2384_v43 }
  0x9c   : > { %2155 = vmatmul.mubr.msk.f32.vlgmr.msra.gmra.mrb[8].mxu1 %vm263_vm1, %v1150_v19  ;;  %2153 = vmatmul.mubr.msk.f32.gmra.mrb[8].mxu0 %vm263_vm1, %v1154_v47 }
  0x9d   : > { %2395 = vmatpush1.bf16.msra.mxu1 %v2394_v46  ;;  %1245 = vmatprep.mubr.f32.mxu0 %v2653_v0 }
  0x9e   : > { %1322 = vmatprep.mubr.f32.mxu1 %v2653_v0  ;;  %2397 = vmatprep.subr.bf16.mxu1 %v2396_v36 }
  0xa0   : > { %2156 = vmatmul.mubr.msk.f32.gmra.mrb[10].mxu1 %vm263_vm1, %v1152_v40  ;;  %2154 = vmatmul.mubr.msk.f32.gmra.mrb[10].mxu0 %vm263_vm1, %v1153_v41 }
  0xa1   : > { %1328 = vmatprep.mubr.f32.mxu1 %v2653_v0  ;;  %2268 = vmatprep.mubr.msk.f32.mxu0 %vm263_vm1, %v1150_v19 }
  0xa2   : > { %2399 = vmatpush1.bf16.msra.mxu1 %v2398_v51 }
  0xa3   : > { %2408 = vmatprep.subr.bf16.mxu1 %v2400_v54 }
  0xa4   : > { %2157 = vmatmul.mubr.msk.f32.gmra.mrb[12].mxu1 %vm263_vm1, %v1154_v47  ;;  %2269 = vmatmul.mubr.msk.f32.vlgmr.msra.gmra.mrb[0].mxu0 %vm263_vm1, %v1152_v40 }
  0xa5   : > { %1334 = vmatprep.mubr.f32.mxu1 %v2653_v0  ;;  %2387 = vmatpush1.bf16.msra.mxu0 %v2386_v57 }
  0xa6   : > { %2271 = vmatprep.mubr.msk.f32.mxu0 %vm263_vm1, %v1154_v47  ;;  %2389 = vmatprep.subr.bf16.mxu0 %v2388_v58 }
  0xa8   : > { %2158 = vmatmul.mubr.msk.f32.gmra.mrb[14].mxu1 %vm263_vm1, %v1153_v41  ;;  %2272 = vmatmul.mubr.msk.f32.gmra.mrb[2].mxu0 %vm263_vm1, %v1153_v41 }
  0xa9   : > { %1636 = vmatprep.mubr.f32.mxu1 %v2653_v0  ;;  %2391 = vmatpush1.bf16.msra.mxu0 %v2390_v61 }
  0xaa   : > { %1547 = vmatprep.mubr.f32.mxu0 %v2653_v0  ;;  %2401 = vmatprep.subr.bf16.mxu0 %v2400_v54 }
  0xac   : > { %2167 = vmatmul.mubr.msk.f32.vlgmr.msra.gmra.mrb[8].mxu1 %vm263_vm1, %v2848_v3  ;;  %2163 = vmatmul.mubr.msk.f32.vlgmr.msra.gmra.mrb[4].mxu0 %vm263_vm1, %v2848_v3 }
  0xad   : > { %1642 = vmatprep.mubr.f32.mxu1 %v2653_v0  ;;  %2403 = vmatpush3.bf16.msra.mxu0 %v2400_v54 }
  0xae   : > { %1553 = vmatprep.mubr.f32.mxu0 %v2653_v0  ;;  %2410 = vmatpush3.bf16.msra.mxu1 %v2400_v54 }
  0xaf   : > { %2405 = vmatprep.subr.bf16.mxu0 %v2404_v2  ;;  %2409 = vmatprep.subr.bf16.mxu1 %v2404_v2 }
  0xb0   : > { %2168 = vmatmul.mubr.msk.f32.gmra.mrb[10].mxu1 %vm263_vm1, %v2851_v4  ;;  %2164 = vmatmul.mubr.msk.f32.gmra.mrb[6].mxu0 %vm263_vm1, %v2851_v4 }
  0xb1   : > { %1648 = vmatprep.mubr.f32.mxu1 %v2653_v0  ;;  %1559 = vmatprep.mubr.f32.mxu0 %v2653_v0 }
  0xb2   : > { %2407 = vmatpush3.bf16.msra.mxu0 %v2404_v2  ;;  %2411 = vmatpush3.bf16.msra.mxu1 %v2404_v2 }
  0xb4   : > { %2169 = vmatmul.mubr.msk.f32.gmra.mrb[12].mxu1 %vm263_vm1, %v2858_v5  ;;  %2165 = vmatmul.mubr.msk.f32.gmra.mrb[8].mxu0 %vm263_vm1, %v2858_v5 }
  0xb5   : > { %1654 = vmatprep.mubr.f32.mxu1 %v2653_v0  ;;  %1565 = vmatprep.mubr.f32.mxu0 %v2653_v0  ;;  %v3002_v0 = vshrl.u32 %v1768_v6, 7 }
  0xb7   : > { %v1770_v7 = vsub.s32 0, %v3002_v0  ;;  %v1778_v16 = vsub.s32 2, %v3002_v0  ;;  %v1782_v17 = vsub.s32 3, %v3002_v0  ;;  %v1786_v51 = vsub.s32 4, %v3002_v0 }
  0xb8   : > { %2170 = vmatmul.mubr.msk.f32.gmra.mrb[14].mxu1 %vm263_vm1, %v2843_v62  ;;  %2166 = vmatmul.mubr.msk.f32.gmra.mrb[10].mxu0 %vm263_vm1, %v2843_v62 }
  0xb9   : > { %2285 = vmatprep.mubr.msk.f32.mxu1 %vm263_vm1, %v2858_v5  ;;  %2282 = vmatprep.mubr.msk.f32.mxu0 %vm263_vm1, %v2848_v3  ;;  %v1774_v5 = vsub.s32 1, %v3002_v0  ;;  %v3012_v3 = vrot.slane %v3008_v8, %v1770_v7  ;;  %v1779_v21 = vrot.slane %v3008_v8, %v1778_v16  ;;  %v3023_v23 = vrot.slane %v3008_v8, %v1782_v17 }
  0xba   : > { %v1787_v2 = vrot.slane %v3008_v8, %v1786_v51 }
  0xbc   : > { %2286 = vmatmul.mubr.msk.f32.vlgmr.msra.gmra.mrb[16].mxu1 %vm263_vm1, %v2843_v62  ;;  %2283 = vmatmul.mubr.msk.f32.vlgmr.msra.gmra.mrb[0].mxu0 %vm263_vm1, %v2851_v4  ;;  %v3015_v62 = vrot.slane %v3008_v8, %v1774_v5 }
 0x12f   : > { %v338_v4 = vpop.f32.mrb[0].mxu1 }
 0x130   : > { %v340_v9 = vpop.f32.mrb[1].mxu1 }
 0x133   : > { %v344_v10 = vpop.f32.mrb[2].mxu1 }
 0x134   : > { %v346_v11 = vpop.f32.mrb[3].mxu1 }
 0x137   : > { %v350_v12 = vpop.f32.mrb[4].mxu1 }
 0x138   : > { %v352_v13 = vpop.f32.mrb[5].mxu1 }
 0x13b   : > { %v356_v14 = vpop.f32.mrb[6].mxu1 }
 0x13c   : > { %v358_v15 = vpop.f32.mrb[7].mxu1 }
 0x17b   : > { %v2273_v18 = vpop.f32.mrb[2].mxu0 }
 0x17c   : > { %v3020_v22 = vpop.f32.mrb[3].mxu0 }
 0x17f   : > { %v1638_v24 = vpop.f32.mrb[8].mxu1  ;;  %v1549_v26 = vpop.f32.mrb[4].mxu0 }
 0x180   : > { %v3025_v27 = vadd.f32 %v1779_v21, %v1638_v24  ;;  %v1640_v28 = vpop.f32.mrb[9].mxu1  ;;  %v2412_v29 = vadd.f32 %v1549_v26, %v338_v4  ;;  %v1551_v30 = vpop.f32.mrb[5].mxu0 }
 0x181   : > { %v2413_v32 = vadd.f32 %v1551_v30, %v340_v9  ;;  %v1796_v33 = vadd.f32 %v3023_v23, %v1640_v28 }
 0x182   : > { %v1815_v31 = vmax.f32 %v3025_v27, 0.0  ;;  %v3030_v34 = vadd.f32 %v2412_v29, %v3012_v3 }
 0x183   : > { %v1644_v19 = vpop.f32.mrb[10].mxu1  ;;  %v3033_v20 = vadd.f32 %v2413_v32, %v3015_v62  ;;  %v1555_v35 = vpop.f32.mrb[6].mxu0  ;;  %v1816_v25 = vmax.f32 %v1796_v33, 0.0  ;;  %v1960_v33 = vand.u32 127, %v1768_v6 }
 0x184   : > { %v3035_v37 = vadd.f32 %v1779_v21, %v1644_v19  ;;  %1845 = vrot.lane.b32.xlu0 %v1815_v31, %s2654_s27  ;;  %v1646_v39 = vpop.f32.mrb[11].mxu1  ;;  %v2414_v40 = vadd.f32 %v1555_v35, %v344_v10  ;;  %v1557_v41 = vpop.f32.mrb[7].mxu0  ;;  %v1813_v32 = vmax.f32 %v3030_v34, 0.0 }
 0x185   : > { %v2415_v43 = vadd.f32 %v1557_v41, %v346_v11  ;;  %v1801_v44 = vadd.f32 %v3023_v23, %v1646_v39  ;;  %v1962_v6 = vadd.s32 256, %v1960_v33 }
 0x186   : > { %v1820_v42 = vmax.f32 %v3035_v37, 0.0  ;;  %v3043_v45 = vadd.f32 %v2414_v40, %v3012_v3 }
 0x187   : > { %v1650_v46 = vpop.f32.mrb[12].mxu1  ;;  %v3046_v47 = vadd.f32 %v2415_v43, %v3015_v62  ;;  %v1561_v36 = vpop.f32.mrb[8].mxu0  ;;  %v1821_v52 = vmax.f32 %v1801_v44, 0.0  ;;  %v1967_v43 = vand.u32 31, %v1960_v33 }
 0x188   : > { %1847 = vrot.lane.b32.xlu0 %v1816_v25, %s2654_s27  ;;  %1851 = vrot.lane.b32.xlu1 %v1820_v42, %s2654_s27  ;;  %v1652_v48 = vpop.f32.mrb[13].mxu1  ;;  %v2416_v49 = vadd.f32 %v1561_v36, %v350_v12  ;;  %v1563_v50 = vpop.f32.mrb[9].mxu0  ;;  %v3054_v53 = vadd.f32 %v1779_v21, %v1650_v46  ;;  %v1818_v19 = vmax.f32 %v3043_v45, 0.0 }
 0x189   : > { %v1806_v38 = vadd.f32 %v3023_v23, %v1652_v48  ;;  %v2417_v54 = vadd.f32 %v1563_v50, %v352_v13  ;;  %vm3100_vm6 = vcmp.lt.s32.totalorder %v1967_v43, 27 }
 0x18a   : > { %v3057_v55 = vadd.f32 %v2416_v49, %v3012_v3  ;;  %v1825_v0 = vmax.f32 %v3054_v53, 0.0 }
 0x18b   : > { %v1826_v56 = vmax.f32 %v1806_v38, 0.0  ;;  %v1656_v57 = vpop.f32.mrb[14].mxu1  ;;  %v3060_v58 = vadd.f32 %v2417_v54, %v3015_v62  ;;  %v1567_v59 = vpop.f32.mrb[10].mxu0  ;;  %v1961_v54 = vadd.s32 128, %v1960_v33 }
 0x18c   : > { %v3062_v60 = vadd.f32 %v1779_v21, %v1656_v57  ;;  %1853 = vrot.lane.b32.xlu0 %v1821_v52, %s2654_s27  ;;  %v1658_v61 = vpop.f32.mrb[15].mxu1  ;;  %v2418_v63 = vadd.f32 %v1567_v59, %v356_v14  ;;  %v1569_v1 = vpop.f32.mrb[11].mxu0  ;;  %v1823_v44 = vmax.f32 %v3057_v55, 0.0  ;;  %v1819_v55 = vmax.f32 %v3046_v47, 0.0 }
 0x18d   : > { %1859 = vrot.lane.b32.xlu1 %v1826_v56, %s2654_s27  ;;  %v2419_v5 = vadd.f32 %v1569_v1, %v358_v15  ;;  %v1811_v17 = vadd.f32 %v3023_v23, %v1658_v61  ;;  %v1981_v57 = vand.u32 31, %v1962_v6  ;;  %v1814_v47 = vmax.f32 %v3033_v20, 0.0 }
 0x18e   : > { %v1830_v7 = vmax.f32 %v3062_v60, 0.0  ;;  %v3070_v4 = vadd.f32 %v2418_v63, %v3012_v3 }
 0x18f   : > { %v2287_v9 = vpop.f32.mrb[16].mxu1  ;;  %v3073_v10 = vadd.f32 %v2419_v5, %v3015_v62  ;;  %v2284_v11 = vpop.f32.mrb[0].mxu0  ;;  %v1831_v26 = vmax.f32 %v1811_v17, 0.0  ;;  %vm3124_vm7 = vcmp.lt.s32.totalorder %v1981_v57, 27 }
 0x190   : > { %v2420_v12 = vadd.f32 %v2287_v9, %v2273_v18  ;;  %1857 = vrot.lane.b32.xlu0 %v1825_v0, %s2654_s27  ;;  %v1737_v13 = vpop.f32.mrb[17].mxu1  ;;  %v1802_v8 = vadd.f32 %v2284_v11, %v1787_v2  ;;  %v1727_v14 = vpop.f32.mrb[1].mxu0 }
 0x191   : > { %v2421_v16 = vadd.f32 %v1737_v13, %v3020_v22  ;;  %1863 = vrot.lane.b32.xlu1 %v1830_v7, %s2654_s27  ;;  %v1797_v15 = vadd.f32 %v1787_v2, %v1727_v14  ;;  %v1828_v14 = vmax.f32 %v3070_v4, 0.0 }
 0x192   : > { %v1822_v3 = vmax.f32 %v1802_v8, 0.0  ;;  %v1812_v21 = vadd.f32 %v2420_v12, %v1787_v2  ;;  %v1974_v8 = vand.u32 31, %v1961_v54 }
 0x193   : > { %v1807_v62 = vadd.f32 %v2421_v16, %v1787_v2  ;;  %v1817_v24 = vmax.f32 %v1797_v15, 0.0  ;;  %v1824_v2 = vmax.f32 %v3060_v58, 0.0 }
 0x194   : > { %v1832_v22 = vmax.f32 %v1812_v21, 0.0  ;;  %vm3136_vm8 = vcmp.lt.s32.totalorder %v1974_v8, 27 }
 0x195   : > { %v1827_v18 = vmax.f32 %v1807_v62, 0.0  ;;  %1855 = vrot.lane.b32.xlu1 %v1822_v3, %s2654_s27 }
 0x197   : > { %1861 = vrot.lane.b32.xlu0 %v1827_v18, %s2654_s27 }
 0x199   : > { %1849 = vrot.lane.b32.xlu1 %v1817_v24, %s2654_s27 }
 0x19b   : > { %1865 = vrot.lane.b32.xlu0 %v1831_v26, %s2654_s27 }
 0x19d   : > { %1867 = vrot.lane.b32.xlu1 %v1832_v22, %s2654_s27 }
 0x1f6   : > { %v1846_v28 = vpop.permute.xlu0 %1845 }
 0x1fa   : > { %v1848_v23 = vpop.permute.xlu0 %1847  ;;  %v1852_v29 = vpop.permute.xlu1 %1851 }
 0x1fb   : > { %v1870_v30 = vsel %vm1869_vm5, %v1846_v28, %v1848_v23 }
 0x1fc   : > { %v1890_v35 = vmax.f32 %v1813_v32, %v1870_v30 }
 0x1fe   : > { %v1854_v39 = vpop.permute.xlu0 %1853  ;;  %v1914_v46 = vrot.slane %v1890_v35, 1 }
 0x1ff   : > { %v1872_v40 = vsel %vm1869_vm5, %v1852_v29, %v1854_v39  ;;  %v1860_v41 = vpop.permute.xlu1 %1859 }
 0x200   : > { %v1893_v25 = vmax.f32 %v1818_v19, %v1872_v40 }
 0x202   : > { %v1915_v36 = vrot.slane %v1893_v25, 1  ;;  %v1858_v48 = vpop.permute.xlu0 %1857 }
 0x203   : > { %v1874_v34 = vsel %vm1869_vm5, %v1858_v48, %v1860_v41  ;;  %v1864_v49 = vpop.permute.xlu1 %1863 }
 0x204   : > { %v1916_v50 = vsel %vm255_vm0, %v1914_v46, %v1915_v36  ;;  %v3098_v45 = vmax.f32 %v1823_v44, %v1874_v34 }
 0x205   : > { %v1947_v51 = vmax.f32 %v1890_v35, %v1916_v50 }
 0x206   : > { %v1923_v52 = vrot.slane %v3098_v45, 1 }
 0x207   : > { %v1856_v56 = vpop.permute.xlu1 %1855  ;;  %v2002_v59 = vsel %vm3100_vm6, %v1947_v51, 0.0 }
 0x208   : > { %v1924_v61 = vsel %vm255_vm0, %v1915_v36, %v1923_v52  ;;  %v1873_v63 = vsel %vm1869_vm5, %v1854_v39, %v1856_v56  ;;  %v1895_v1 = vmax.f32 %v1820_v42, %v1856_v56  ;;  %2014 = vst [vmem:[%s3107_s15] sm:$0xff] %v2002_v59 }
 0x209   : > { %v1950_v5 = vmax.f32 %v1893_v25, %v1924_v61  ;;  %v1894_v9 = vmax.f32 %v1819_v55, %v1873_v63  ;;  %v1862_v11 = vpop.permute.xlu0 %1861 }
 0x20a   : > { %v1875_v12 = vsel %vm1869_vm5, %v1860_v41, %v1862_v11  ;;  %v1898_v13 = vmax.f32 %v1825_v0, %v1862_v11  ;;  %v1921_v3 = vrot.slane %v1895_v1, 1  ;;  %v1829_v0 = vmax.f32 %v3073_v10, 0.0 }
 0x20b   : > { %v1897_v16 = vmax.f32 %v1824_v2, %v1875_v12  ;;  %v1850_v42 = vpop.permute.xlu1 %1849  ;;  %v2005_v58 = vsel %vm3100_vm6, %v1950_v5, 0.0  ;;  %v1918_v4 = vrot.slane %v1894_v9, 1 }
 0x20c   : > { %v1927_v15 = vrot.slane %v1898_v13, 1  ;;  %v1871_v20 = vsel %vm1869_vm5, %v1848_v23, %v1850_v42  ;;  %v1892_v53 = vmax.f32 %v1815_v31, %v1850_v42  ;;  %2017 = vst [vmem:[%s3107_s15 + $0x18] sm:$0xff] %v2005_v58 }
 0x20d   : > { %v1925_v62 = vrot.slane %v1897_v16, 1  ;;  %v1891_v17 = vmax.f32 %v1814_v47, %v1871_v20  ;;  %v1866_v18 = vpop.permute.xlu0 %1865 }
 0x20e   : > { %v1928_v21 = vsel %vm255_vm0, %v1921_v3, %v1927_v15  ;;  %v1920_v26 = vrot.slane %v1892_v53, 1  ;;  %v1876_v22 = vsel %vm1869_vm5, %v1864_v49, %v1866_v18 }
 0x20f   : > { %v1926_v27 = vsel %vm255_vm0, %v1918_v4, %v1925_v62  ;;  %v1952_v31 = vmax.f32 %v1895_v1, %v1928_v21  ;;  %v1917_v28 = vrot.slane %v1891_v17, 1  ;;  %v1899_v23 = vmax.f32 %v1828_v14, %v1876_v22  ;;  %v1868_v10 = vpop.permute.xlu1 %1867 }
 0x210   : > { %v1951_v29 = vmax.f32 %v1894_v9, %v1926_v27  ;;  %v1922_v30 = vsel %vm255_vm0, %v1920_v26, %v1921_v3  ;;  %v1877_v32 = vsel %vm1869_vm5, %v1866_v18, %v1868_v10  ;;  %v1901_v33 = vmax.f32 %v1830_v7, %v1868_v10 }
 0x211   : > { %v1919_v19 = vsel %vm255_vm0, %v1917_v28, %v1918_v4  ;;  %v1949_v35 = vmax.f32 %v1892_v53, %v1922_v30  ;;  %v2007_v39 = vsel %vm3124_vm7, %v1952_v31, 0.0  ;;  %v1929_v40 = vrot.slane %v1899_v23, 1 }
 0x212   : > { %v1948_v41 = vmax.f32 %v1891_v17, %v1919_v19  ;;  %v2006_v25 = vsel %vm3136_vm8, %v1951_v29, 0.0  ;;  %2019 = vst.msk [vmem:[%s3107_s15 + $0x28] sm:$0xff] %vm1869_vm5, %v2007_v39  ;;  %v1900_v43 = vmax.f32 %v1829_v0, %v1877_v32  ;;  %v1933_v44 = vrot.slane %v1901_v33, 1 }
 0x213   : > { %v2004_v60 = vsel %vm3124_vm7, %v1949_v35, 0.0  ;;  %2018 = vst [vmem:[%s3107_s15 + $0x20] sm:$0xff] %v2006_v25  ;;  %v1930_v7 = vsel %vm255_vm0, %v1923_v52, %v1929_v40  ;;  %v1956_v46 = vmax.f32 %v1899_v23, %v1929_v40 }
 0x214   : > { %v2003_v36 = vsel %vm3136_vm8, %v1948_v41, 0.0  ;;  %2016 = vst.msk [vmem:[%s3107_s15 + $0x10] sm:$0xff] %vm1869_vm5, %v2004_v60  ;;  %v1953_v48 = vmax.f32 %v3098_v45, %v1930_v7  ;;  %v1931_v34 = vrot.slane %v1900_v43, 1  ;;  %v1934_v49 = vsel %vm255_vm0, %v1927_v15, %v1933_v44 }
 0x215   : > { %2015 = vst [vmem:[%s3107_s15 + $0x8] sm:$0xff] %v2003_v36  ;;  %v2011_v6 = vsel %vm3100_vm6, %v1956_v46, 0.0  ;;  %v1955_v50 = vmax.f32 %v1898_v13, %v1934_v49  ;;  %v1958_v51 = vmax.f32 %v1901_v33, %v1933_v44 }
 0x216   : > { %v2008_v52 = vsel %vm3100_vm6, %v1953_v48, 0.0  ;;  %2023 = vst [vmem:[%s3107_s15 + $0x48] sm:$0x7] %v2011_v6  ;;  %v1932_v45 = vsel %vm255_vm0, %v1925_v62, %v1931_v34  ;;  %v1957_v54 = vmax.f32 %v1900_v43, %v1931_v34 }
 0x217   : > { %2020 = vst [vmem:[%s3107_s15 + $0x30] sm:$0xff] %v2008_v52  ;;  %v1954_v55 = vmax.f32 %v1897_v16, %v1932_v45  ;;  %v2010_v56 = vsel %vm3124_vm7, %v1955_v50, 0.0  ;;  %v2013_v57 = vsel %vm3124_vm7, %v1958_v51, 0.0 }
 0x218   : > { %v2012_v59 = vsel %vm3136_vm8, %v1957_v54, 0.0  ;;  %2022 = vst.msk [vmem:[%s3107_s15 + $0x40] sm:$0xff] %vm1869_vm5, %v2010_v56 }
 0x219   : > { %2026 = vst.msk [vmem:[%s3107_s15 + $0x58] sm:$0x7] %vm2025_vm9, %v2013_v57  ;;  %v2009_v38 = vsel %vm3136_vm8, %v1954_v55, 0.0  ;;  %2024 = vst [vmem:[%s3107_s15 + $0x50] sm:$0x7] %v2012_v59 }
 0x21a   : > { %2021 = vst [vmem:[%s3107_s15 + $0x38] sm:$0xff] %v2009_v38 }
 0x21b PF: > { %p14_p8 = scmp.ge.s32.totalorder %s2719_s22, 4   ;;  %s3218_s12 = smov %s2637_s13 }
 0x21c   : > { %s3219_s13 = smov %s2641_s14  ;;  %s3220_s14 = smov %s2745_s10 }
 0x21d   : > { %s3221_s15 = smov %s2719_s22  ;;  %16 = sbr.rel (!%p14_p8) target bundleno = 4 (0x4), region = 80 }
 0x224   :  { %2048 = vsyncpa [#allocation3], 1 }
 0x225   :  { %2050 = vsyncpa [#allocation3 + $0x1], 1 }
 0x226   :  { %2051 = vsyncpa [#allocation5], 1 }

</bundles_post_ra>
